<compile_context>
chip_gen: v7x
topology: tpu7x:2x2x1
jax: 0.10.0
libtpu: 0.0.40
codegen_flags: <defaults>
</compile_context>

<pallas_src>
import numpy as np
import jax
import jax.numpy as jnp
from jax.experimental import pallas as pl
from jax.experimental.pallas import tpu as pltpu

ALPHA = 0.2  # opt.alpha from Config


def _myloss_kernel(inp_ref, tgt_ref, w_ref, out_ref):
    j = pl.program_id(1)

    # Output block (8, tn) is resident across the column (reduction) axis;
    # zero it at the start of every row-block sweep.
    @pl.when(j == 0)
    def _():
        out_ref[...] = jnp.zeros_like(out_ref)

    diff = (inp_ref[...] - tgt_ref[...]).astype(jnp.float32)
    contrib = diff * diff * w_ref[...]          # weighted squared error (VPU)
    tm, tn = contrib.shape
    # Fold sublane-groups of 8 down onto the (8, tn) accumulator: layout-aligned
    # reshape + vreg adds — all VPU work, no XLU full reduction per tile.
    out_ref[...] += jnp.sum(contrib.reshape(tm // 8, 8, tn), axis=0)


def _pick_block(dim, unit, cap):
    """Largest block <= cap that divides `dim` and is a multiple of `unit`;
    falls back to the full extent for small dims."""
    if dim <= cap:
        return dim
    b = (cap // unit) * unit
    while b >= unit:
        if dim % b == 0:
            return b
        b -= unit
    return dim


def _pad2d(x, mp, np_):
    m, n = x.shape
    if m == mp and n == np_:
        return x
    return jnp.pad(x, ((0, mp - m), (0, np_ - n)))


def myloss_pallas(one_index, zero_index, target, inp, *, alpha=ALPHA):
    """one_index / zero_index: tuples (rows, cols) of int32 arrays.
    target, inp: float [M, N] (f32 or bf16; math accumulates in f32)."""
    M, N = inp.shape
    Mp = ((M + 7) // 8) * 8
    Np = ((N + 127) // 128) * 128

    # Glue (plain JAX): one combined weight matrix built in a single scatter-add,
    # directly at the padded shape (padded region keeps weight 0).  `.add`
    # mirrors PyTorch advanced indexing: repeated (row, col) pairs contribute
    # once per occurrence.
    rows = jnp.concatenate([one_index[0], zero_index[0]]).astype(jnp.int32)
    cols = jnp.concatenate([one_index[1], zero_index[1]]).astype(jnp.int32)
    vals = jnp.concatenate([
        jnp.full(one_index[0].shape, 1.0 - alpha, jnp.float32),
        jnp.full(zero_index[0].shape, alpha, jnp.float32),
    ])
    w = jnp.zeros((Mp, Np), jnp.float32).at[rows, cols].add(vals)

    inp_p = _pad2d(inp, Mp, Np)
    tgt_p = _pad2d(target, Mp, Np)

    # Tile sizes: as large as comfortably fits scoped VMEM on all generations.
    tm = _pick_block(Mp, 8, 256)
    tn = _pick_block(Np, 128, 1024)
    grid_m, grid_n = Mp // tm, Np // tn

    tile_spec = pl.BlockSpec((tm, tn), lambda i, j: (i, j))

    partials = pl.pallas_call(
        _myloss_kernel,
        out_shape=jax.ShapeDtypeStruct((grid_m * 8, tn), jnp.float32),
        grid_spec=pltpu.PrefetchScalarGridSpec(
            num_scalar_prefetch=0,
            grid=(grid_m, grid_n),
            in_specs=[tile_spec, tile_spec, tile_spec],
            out_specs=pl.BlockSpec((8, tn), lambda i, j: (i, 0)),
        ),
        compiler_params=pltpu.CompilerParams(
            # row-block axis parallel (disjoint output blocks) -> 2 TCs on v7x;
            # column axis is the in-VMEM accumulation (reduction) axis, last.
            dimension_semantics=("parallel", "arbitrary"),
        ),
    )(inp_p, tgt_p, w)

    # Tiny final reduction of the lane-dense per-row-block partials.
    return jnp.sum(partials)


def myloss_ref(one_index, zero_index, target, inp, *, alpha=ALPHA):
    loss_sum = (inp - target) ** 2
    return ((1.0 - alpha) * loss_sum[one_index[0], one_index[1]].sum()
            + alpha * loss_sum[zero_index[0], zero_index[1]].sum())


if __name__ == "__main__":
    key = jax.random.PRNGKey(0)
    # Small, deliberately (8,128)-UNaligned association-matrix shape
    # (miRNA x disease) to exercise the padding path.
    M, N = 30, 200

    k1, k2 = jax.random.split(key)
    # target: binary association matrix; input: predicted scores
    target_np = np.asarray(jax.random.bernoulli(k1, p=0.15, shape=(M, N)),
                           dtype=np.float32)
    inp = jax.random.uniform(k2, (M, N), dtype=jnp.float32)

    # one_index = positions of known associations, zero_index = the rest
    one_r, one_c = np.nonzero(target_np == 1.0)
    zero_r, zero_c = np.nonzero(target_np == 0.0)
    one_index = (jnp.asarray(one_r, jnp.int32), jnp.asarray(one_c, jnp.int32))
    zero_index = (jnp.asarray(zero_r, jnp.int32), jnp.asarray(zero_c, jnp.int32))
    target = jnp.asarray(target_np)

    got = jax.block_until_ready(myloss_pallas(one_index, zero_index, target, inp))
    want = jax.block_until_ready(myloss_ref(one_index, zero_index, target, inp))

    np.testing.assert_allclose(np.asarray(got), np.asarray(want), rtol=1e-5, atol=1e-5)
    print("KERNEL_OK")
</pallas_src>

<mosaic_0001>
module attributes {stable_mosaic.version = 11 : i64} {
  func.func @_myloss_kernel(%arg0: i32, %arg1: i32, %arg2: memref<32x256xf32, #tpu.memory_space<vmem>>, %arg3: memref<32x256xf32, #tpu.memory_space<vmem>>, %arg4: memref<32x256xf32, #tpu.memory_space<vmem>>, %arg5: memref<8x256xf32, #tpu.memory_space<vmem>>) attributes {dimension_semantics = [#tpu.dimension_semantics<parallel>, #tpu.dimension_semantics<arbitrary>], iteration_bounds = array<i64: 1, 1>, scalar_prefetch = 0 : i64, scratch_operands = 0 : i64, tpu.core_type = #tpu.core_type<tc>, window_params = [{transform_indices = @transform_0, window_bounds = array<i64: 32, 256>}, {transform_indices = @transform_1, window_bounds = array<i64: 32, 256>}, {transform_indices = @transform_2, window_bounds = array<i64: 32, 256>}, {transform_indices = @transform_3, window_bounds = array<i64: 8, 256>}]} {
    %c0_i32 = arith.constant 0 : i32
    %0 = arith.cmpi eq, %arg1, %c0_i32 : i32
    %1 = arith.extui %0 : i1 to i32
    %c0_i32_0 = arith.constant 0 : i32
    %2 = arith.cmpi ne, %1, %c0_i32_0 : i32
    scf.if %2 {
      %cst_10 = arith.constant 0.000000e+00 : f32
      %14 = vector.broadcast %cst_10 : f32 to vector<8x256xf32>
      %c0_11 = arith.constant 0 : index
      %c0_12 = arith.constant 0 : index
      %15 = vector.load %arg5[%c0_11, %c0_12] : memref<8x256xf32, #tpu.memory_space<vmem>>, vector<8x256xf32>
      tpu.vector_store %arg5[%c0_11, %c0_12], %14 {strides = array<i32>} : memref<8x256xf32, #tpu.memory_space<vmem>>, vector<8x256xf32>,
    } else {
    }
    %c0 = arith.constant 0 : index
    %c0_1 = arith.constant 0 : index
    %3 = vector.load %arg2[%c0, %c0_1] : memref<32x256xf32, #tpu.memory_space<vmem>>, vector<32x256xf32>
    %c0_2 = arith.constant 0 : index
    %c0_3 = arith.constant 0 : index
    %4 = vector.load %arg3[%c0_2, %c0_3] : memref<32x256xf32, #tpu.memory_space<vmem>>, vector<32x256xf32>
    %5 = arith.subf %3, %4 : vector<32x256xf32>
    %6 = arith.mulf %5, %5 : vector<32x256xf32>
    %c0_4 = arith.constant 0 : index
    %c0_5 = arith.constant 0 : index
    %7 = vector.load %arg4[%c0_4, %c0_5] : memref<32x256xf32, #tpu.memory_space<vmem>>, vector<32x256xf32>
    %8 = arith.mulf %6, %7 : vector<32x256xf32>
    %c0_6 = arith.constant 0 : index
    %c0_7 = arith.constant 0 : index
    %9 = vector.load %arg5[%c0_6, %c0_7] : memref<8x256xf32, #tpu.memory_space<vmem>>, vector<8x256xf32>
    %10 = vector.shape_cast %8 : vector<32x256xf32> to vector<4x8x256xf32>
    %cst = arith.constant dense<0.000000e+00> : vector<8x256xf32>
    %11 = vector.multi_reduction <add>, %10, %cst [0] : vector<4x8x256xf32> to vector<8x256xf32>
    %12 = arith.addf %9, %11 : vector<8x256xf32>
    %c0_8 = arith.constant 0 : index
    %c0_9 = arith.constant 0 : index
    %13 = vector.load %arg5[%c0_8, %c0_9] : memref<8x256xf32, #tpu.memory_space<vmem>>, vector<8x256xf32>
    tpu.vector_store %arg5[%c0_8, %c0_9], %12 {strides = array<i32>} : memref<8x256xf32, #tpu.memory_space<vmem>>, vector<8x256xf32>,
    return
  }
  func.func @transform_0(%arg0: i32, %arg1: i32) -> (i32, i32) {
    %c0_i32 = arith.constant 0 : i32
    return %arg0, %arg1 : i32, i32
  }
  func.func @transform_1(%arg0: i32, %arg1: i32) -> (i32, i32) {
    %c0_i32 = arith.constant 0 : i32
    return %arg0, %arg1 : i32, i32
  }
  func.func @transform_2(%arg0: i32, %arg1: i32) -> (i32, i32) {
    %c0_i32 = arith.constant 0 : i32
    return %arg0, %arg1 : i32, i32
  }
  func.func @transform_3(%arg0: i32, %arg1: i32) -> (i32, i32) {
    %c0_i32 = arith.constant 0 : i32
    %c0_i32_0 = arith.constant 0 : i32
    return %arg0, %c0_i32 : i32, i32
  }
}

</mosaic_0001>

<bundles_post_ra>
// kernel: tpu_custom_call.1
= control target key start
LH: loop header
LB: loop body
LE: loop exit
PB: predicated region body
PF: predicated region fallthrough
CT: control target
= control target key end

     0   :  { %8 = vsyncpa [#allocation3], 0  ;;  %s329_s0 = inlined_call_operand.hbm [shape: f32[32,256], index: 0, kind: input, shape index: {}]   ;;  %s330_s1 = inlined_call_operand.hbm [shape: f32[32,256], index: 1, kind: input, shape index: {}]   ;;  %s331_s2 = inlined_call_operand.hbm [shape: f32[32,256], index: 2, kind: input, shape index: {}]   ;;  %s332_s3 = inlined_call_operand.hbm [shape: f32[8,256], index: 3, kind: output, shape index: {}]  }
   0x1   :  { %9 = vsyncpa [#allocation6], 0 }
   0x2   :  { %10 = vsyncpa [#allocation4], 0  ;;  %s239_s12 = smov [#allocation5]   ;;  %s240_s14 = smov [#allocation2]  }
   0x3   :  { %s28_s13 = sshll.u32 %s239_s12, 4  ;;  %s16_s15 = sshll.u32 %s240_s14, 4  ;;  %s29_s13 = int_to_ptr.vmem [resolvable:$true] %s28_s13  ;;  %s265_s15 = int_to_ptr.vmem [resolvable:$true] %s16_s15 }
   0x4   :  { %s145_s18 = scalar_lea.hbm %s330_s1, 1024 }
   0x5   :  { %p146_p0 = scmp.ne.s32.totalorder %s330_s1, %s145_s18  ;;  %p149_p1 = scmp.lt.u32.totalorder %s145_s18, %s330_s1 }
   0x7   :  { %p151_p2 = pnand %p149_p1, %p146_p0 }
   0x9   :  { %154 = shalt.err (!%p151_p2)
}
   0xa   :  { %s155_s23 = scalar_lea.vmem %s29_s13, 1024  ;;  %p160_p4 = scmp.lt.s32.totalorder %s29_s13, %s29_s13 }
   0xb   :  { %p156_p3 = scmp.ne.s32.totalorder %s29_s13, %s155_s23  ;;  %p161_p5 = scmp.lt.s32.totalorder %s155_s23, %s155_s23 }
   0xd   :  { %p162_p6 = por %p161_p5, %p160_p4 }
   0xf   :  { %p163_p7 = pnand %p162_p6, %p156_p3 }
  0x11   :  { %166 = shalt.err (!%p163_p7)
}
  0x12   :  { %s241_s24 = smov 256   ;;  %s242_s25 = smov 16  }
  0x13   :  { %34 = dma.hbm_to_vmem [thread:$0]  %s330_s1, 1024, %s29_s13, [#allocation6], %s241_s24, %s241_s24, %s242_s25  }
  0x14   :  { %s167_s30 = scalar_lea.hbm %s329_s0, 1024 }
  0x15   :  { %p168_p8 = scmp.ne.s32.totalorder %s329_s0, %s167_s30  ;;  %p171_p9 = scmp.lt.u32.totalorder %s167_s30, %s329_s0 }
  0x17   :  { %p173_p10 = pnand %p171_p9, %p168_p8 }
  0x19   :  { %176 = shalt.err (!%p173_p10)
}
  0x1a   :  { %s177_s8 = scalar_lea.vmem %s265_s15, 1024  ;;  %p182_p12 = scmp.lt.s32.totalorder %s265_s15, %s265_s15 }
  0x1b   :  { %p178_p11 = scmp.ne.s32.totalorder %s265_s15, %s177_s8  ;;  %p183_p13 = scmp.lt.s32.totalorder %s177_s8, %s177_s8 }
  0x1d   :  { %p184_p0 = por %p183_p13, %p182_p12 }
  0x1f   :  { %p185_p1 = pnand %p184_p0, %p178_p11 }
  0x21   :  { %188 = shalt.err (!%p185_p1)
}
  0x22   :  { %22 = dma.hbm_to_vmem [thread:$0]  %s329_s0, 1024, %s265_s15, [#allocation3], %s241_s24, %s241_s24, %s242_s25  }
  0x23   :  { %s243_s10 = smov [#allocation7]   ;;  %s189_s14 = scalar_lea.hbm %s331_s2, 1024 }
  0x24   :  { %s40_s11 = sshll.u32 %s243_s10, 4  ;;  %p190_p2 = scmp.ne.s32.totalorder %s331_s2, %s189_s14  ;;  %s41_s11 = int_to_ptr.vmem [resolvable:$true] %s40_s11 }
  0x25   :  { %p193_p3 = scmp.lt.u32.totalorder %s189_s14, %s331_s2 }
  0x27   :  { %p195_p4 = pnand %p193_p3, %p190_p2 }
  0x29   :  { %198 = shalt.err (!%p195_p4)
}
  0x2a   :  { %s199_s20 = scalar_lea.vmem %s41_s11, 1024  ;;  %p204_p6 = scmp.lt.s32.totalorder %s41_s11, %s41_s11 }
  0x2b   :  { %p200_p5 = scmp.ne.s32.totalorder %s41_s11, %s199_s20  ;;  %p205_p7 = scmp.lt.s32.totalorder %s199_s20, %s199_s20 }
  0x2d   :  { %p206_p8 = por %p205_p7, %p204_p6 }
  0x2f   :  { %p207_p9 = pnand %p206_p8, %p200_p5 }
  0x31   :  { %210 = shalt.err (!%p207_p9)
}
  0x32   :  { %46 = dma.hbm_to_vmem [thread:$0]  %s331_s2, 1024, %s41_s11, [#allocation6], %s241_s24, %s241_s24, %s242_s25  }
  0x33   :  { %233 = dma.done.wait [#allocation3], 1024  }
  0x34   :  { %234 = vsyncadd [#allocation3], 4294966272 }
  0x35   :  { %235 = dma.done.wait [#allocation6], 2048  }
  0x36   :  { %236 = vsyncadd [#allocation6], 4294965248  ;;  %v62_v0 = vld [vmem:[#allocation2] sm:$0xff]  ;;  %v64_v1 = vld [vmem:[#allocation2 + $0x10] sm:$0xff]  ;;  %s244_s2 = smov [#allocation8]  }
  0x37   :  { %v66_v2 = vld [vmem:[#allocation2 + $0x20] sm:$0xff]  ;;  %v68_v3 = vld [vmem:[#allocation2 + $0x30] sm:$0xff]  ;;  %v63_v18 = vld [vmem:[#allocation2 + $0x8] sm:$0xff]  ;;  %s128_s21 = sshll.u32 %s244_s2, 4  ;;  %s129_s21 = int_to_ptr.vmem [resolvable:$true] %s128_s21 }
  0x38   :  { %v70_v4 = vld [vmem:[#allocation5] sm:$0xff]  ;;  %v72_v5 = vld [vmem:[#allocation5 + $0x10] sm:$0xff]  ;;  %v65_v19 = vld [vmem:[#allocation2 + $0x18] sm:$0xff]  ;;  %s211_s22 = scalar_lea.vmem %s129_s21, 256  ;;  %p216_p11 = scmp.lt.s32.totalorder %s129_s21, %s129_s21 }
  0x39   :  { %v74_v6 = vld [vmem:[#allocation5 + $0x20] sm:$0xff]  ;;  %v76_v7 = vld [vmem:[#allocation5 + $0x30] sm:$0xff]  ;;  %v78_v8 = vsub.f32 %v62_v0, %v70_v4  ;;  %v80_v9 = vsub.f32 %v64_v1, %v72_v5  ;;  %v67_v20 = vld [vmem:[#allocation2 + $0x28] sm:$0xff]  ;;  %p212_p10 = scmp.ne.s32.totalorder %s129_s21, %s211_s22  ;;  %p217_p12 = scmp.lt.s32.totalorder %s211_s22, %s211_s22 }
  0x3a   :  { %v94_v10 = vld [vmem:[#allocation7] sm:$0xff]  ;;  %v82_v11 = vsub.f32 %v66_v2, %v74_v6  ;;  %v84_v12 = vsub.f32 %v68_v3, %v76_v7  ;;  %v96_v13 = vld [vmem:[#allocation7 + $0x10] sm:$0xff]  ;;  %v69_v23 = vld [vmem:[#allocation2 + $0x38] sm:$0xff] }
  0x3b   :  { %v98_v14 = vld [vmem:[#allocation7 + $0x20] sm:$0xff]  ;;  %v100_v15 = vld [vmem:[#allocation7 + $0x30] sm:$0xff]  ;;  %v86_v16 = vmul.f32 %v78_v8, %v78_v8  ;;  %v88_v17 = vmul.f32 %v80_v9, %v80_v9  ;;  %v71_v24 = vld [vmem:[#allocation5 + $0x8] sm:$0xff]  ;;  %p218_p13 = por %p217_p12, %p216_p11 }
  0x3c   :  { %v90_v21 = vmul.f32 %v82_v11, %v82_v11  ;;  %v92_v22 = vmul.f32 %v84_v12, %v84_v12  ;;  %v73_v25 = vld [vmem:[#allocation5 + $0x18] sm:$0xff]  ;;  %v75_v28 = vld [vmem:[#allocation5 + $0x28] sm:$0xff]  ;;  %v79_v30 = vsub.f32 %v63_v18, %v71_v24 }
  0x3d   :  { %v102_v26 = vmul.f32 %v94_v10, %v86_v16  ;;  %v104_v27 = vmul.f32 %v96_v13, %v88_v17  ;;  %v77_v29 = vld [vmem:[#allocation5 + $0x38] sm:$0xff]  ;;  %v81_v31 = vsub.f32 %v65_v19, %v73_v25  ;;  %v83_v33 = vsub.f32 %v67_v20, %v75_v28  ;;  %v95_v35 = vld [vmem:[#allocation7 + $0x8] sm:$0xff]  ;;  %p219_p0 = pnand %p218_p13, %p212_p10 }
  0x3e   :  { %v106_v32 = vmul.f32 %v98_v14, %v90_v21  ;;  %v85_v34 = vsub.f32 %v69_v23, %v77_v29  ;;  %v97_v36 = vld [vmem:[#allocation7 + $0x18] sm:$0xff]  ;;  %v108_v37 = vmul.f32 %v100_v15, %v92_v22  ;;  %v87_v39 = vmul.f32 %v79_v30, %v79_v30  ;;  %v99_v41 = vld [vmem:[#allocation7 + $0x28] sm:$0xff] }
  0x3f   :  { %v112_v38 = vadd.f32 %v104_v27, %v102_v26  ;;  %v89_v40 = vmul.f32 %v81_v31, %v81_v31  ;;  %v91_v42 = vmul.f32 %v83_v33, %v83_v33  ;;  %v101_v44 = vld [vmem:[#allocation7 + $0x38] sm:$0xff] }
  0x40   :  { %v93_v43 = vmul.f32 %v85_v34, %v85_v34  ;;  %v103_v46 = vmul.f32 %v95_v35, %v87_v39 }
  0x41   :  { %v113_v45 = vadd.f32 %v112_v38, %v106_v32  ;;  %v105_v47 = vmul.f32 %v97_v36, %v89_v40  ;;  %v107_v48 = vmul.f32 %v99_v41, %v91_v42 }
  0x42   :  { %v109_v50 = vmul.f32 %v101_v44, %v93_v43 }
  0x43   :  { %v114_v49 = vadd.f32 %v113_v45, %v108_v37  ;;  %v115_v51 = vadd.f32 %v105_v47, %v103_v46 }
  0x45   :  { %v116_v52 = vadd.f32 %v115_v51, %v107_v48  ;;  %120 = vst [vmem:[#allocation8] sm:$0xff] %v114_v49 }
  0x47   :  { %v117_v53 = vadd.f32 %v116_v52, %v109_v50 }
  0x49   :  { %121 = vst [vmem:[#allocation8 + $0x8] sm:$0xff] %v117_v53 }
  0x4a   :  { %222 = shalt.err (!%p219_p0)
}
  0x4b   :  { %s223_s25 = scalar_lea.hbm %s332_s3, 256 }
  0x4c   :  { %p224_p1 = scmp.ne.s32.totalorder %s332_s3, %s223_s25  ;;  %p227_p2 = scmp.lt.u32.totalorder %s223_s25, %s332_s3 }
  0x4e   :  { %p229_p3 = pnand %p227_p2, %p224_p1 }
  0x50   :  { %232 = shalt.err (!%p229_p3)
}
  0x51   :  { %131 = dma.vmem_to_hbm [thread:$0]  %s129_s21, 256, %s332_s3, [#allocation4]  }
  0x52   :  { %237 = dma.done.wait [#allocation4], 256  }
  0x53   :  { %238 = vsyncadd [#allocation4], 4294967040 }
  0x54   :  { %135 = vsyncpa [#allocation3], 1 }
  0x55   :  { %136 = vsyncpa [#allocation6], 1 }
  0x56   :  { %137 = vsyncpa [#allocation4], 1 }

</bundles_post_ra>
